<compile_context>
chip_gen: v5e
topology: v5e:2x2
jax: 0.10.0
libtpu: 0.0.40
codegen_flags: <defaults>
</compile_context>

<pallas_src>
import functools

import jax
import jax.numpy as jnp
from jax.experimental import pallas as pl
from jax.experimental.pallas import tpu as pltpu


_NUM_PARALLEL = 2                    # leading "parallel" grid axis (v7x dual-TC)
_VMEM_INPUT_BUDGET = 16 * 1024 * 1024  # bytes for double-buffered pipelined inputs


def _log_softmax(x):
    m = jnp.max(x, axis=-1, keepdims=True)
    z = x - m
    lse = jnp.log(jnp.sum(jnp.exp(z), axis=-1, keepdims=True))
    return z - lse


def _row_mask(p, i, tile_b, total_batch):
    """(tile_b, 1) bool mask selecting rows < total_batch for this tile."""
    tiles_per_slice = pl.num_programs(1)
    row0 = (p * tiles_per_slice + i) * tile_b
    rows = row0 + jax.lax.broadcasted_iota(jnp.int32, (tile_b, 1), 0)
    return rows < total_batch


def _soft_ce_int_kernel(logits_ref, tgt_ref, acc_ref, *,
                        label_smoothing, num_classes, total_batch, tile_b):
    """Integer class-id targets: closed-form smoothed cross entropy."""
    p = pl.program_id(0)
    i = pl.program_id(1)

    @pl.when(i == 0)
    def _():
        acc_ref[...] = jnp.zeros_like(acc_ref)

    logp = _log_softmax(logits_ref[...].astype(jnp.float32))          # (tile_b, C)

    sum_logp = jnp.sum(logp, axis=-1, keepdims=True)                  # (tile_b, 1)
    tgt = tgt_ref[...]                                                # (tile_b, 1) int32
    cls = jax.lax.broadcasted_iota(jnp.int32, (tile_b, num_classes), 1)
    logp_tgt = jnp.sum(jnp.where(cls == tgt, logp, 0.0),
                       axis=-1, keepdims=True)                        # (tile_b, 1)

    ls = jnp.float32(label_smoothing)
    inv_c = jnp.float32(1.0 / num_classes)
    # one-hot * (1-ls) on the target class, ls/C on the (C-1) other classes
    per_row = -((1.0 - ls) * logp_tgt + ls * inv_c * (sum_logp - logp_tgt))

    per_row = jnp.where(_row_mask(p, i, tile_b, total_batch), per_row, 0.0)
    acc_ref[...] += per_row


def _soft_ce_soft_kernel(logits_ref, tgt_ref, acc_ref, *,
                         label_smoothing, num_classes, total_batch, tile_b):
    """Float soft targets (kept in native dtype on the wire, f32 math here)."""
    p = pl.program_id(0)
    i = pl.program_id(1)

    @pl.when(i == 0)
    def _():
        acc_ref[...] = jnp.zeros_like(acc_ref)

    logp = _log_softmax(logits_ref[...].astype(jnp.float32))          # (tile_b, C)
    t = tgt_ref[...].astype(jnp.float32)                              # (tile_b, C)

    ls = jnp.float32(label_smoothing)
    inv_c = jnp.float32(1.0 / num_classes)
    t_s = t * (1.0 - ls) + ls * inv_c * (1.0 - t)

    per_row = -jnp.sum(t_s * logp, axis=-1, keepdims=True)            # (tile_b, 1)
    per_row = jnp.where(_row_mask(p, i, tile_b, total_batch), per_row, 0.0)
    acc_ref[...] += per_row


def _choose_tile_b(batch, per_row_bytes, num_parallel):
    """Largest batch tile (multiple of 16) whose double-buffered inputs fit budget."""
    tb = _VMEM_INPUT_BUDGET // max(2 * per_row_bytes, 1)   # x2: pipeline double-buffer
    tb = int(max(16, min(tb, 2048)))
    # Don't tile past this slice's share of the (rounded-up) batch.
    per_slice = -(-batch // num_parallel)
    per_slice = -(-per_slice // 16) * 16
    tb = min(tb, max(per_slice, 16))
    return max((tb // 16) * 16, 16)


def soft_cross_entropy_loss(outputs, targets, label_smoothing=0.0):
    """Pallas equivalent of SoftCrossEntropyLoss.forward.

    outputs: (B, C) float logits (f32 or bf16)
    targets: (B,) integer class ids  OR  (B, C) float soft targets (any float dtype)
    returns: scalar float32 mean loss
    """
    B, C = outputs.shape
    is_int = jnp.issubdtype(targets.dtype, jnp.integer)

    if is_int:
        per_row_bytes = C * outputs.dtype.itemsize + 4        # logits tile + id column
    else:
        per_row_bytes = C * (outputs.dtype.itemsize + targets.dtype.itemsize)

    P = _NUM_PARALLEL
    tile_b = _choose_tile_b(B, per_row_bytes, P)
    T = -(-B // (P * tile_b))                                 # tiles per parallel slice
    padded_B = P * T * tile_b
    pad = padded_B - B

    logits = jnp.pad(outputs, ((0, pad), (0, 0))) if pad else outputs

    if is_int:
        tgt = targets.reshape(B, 1).astype(jnp.int32)
        if pad:
            tgt = jnp.pad(tgt, ((0, pad), (0, 0)))
        kernel = functools.partial(
            _soft_ce_int_kernel,
            label_smoothing=float(label_smoothing), num_classes=int(C),
            total_batch=int(B), tile_b=int(tile_b))
        tgt_spec = pl.BlockSpec((tile_b, 1), lambda p, i: (p * T + i, 0))
    else:
        tgt = jnp.pad(targets, ((0, pad), (0, 0))) if pad else targets  # native dtype
        kernel = functools.partial(
            _soft_ce_soft_kernel,
            label_smoothing=float(label_smoothing), num_classes=int(C),
            total_batch=int(B), tile_b=int(tile_b))
        tgt_spec = pl.BlockSpec((tile_b, C), lambda p, i: (p * T + i, 0))

    partial_sums = pl.pallas_call(
        kernel,
        out_shape=jax.ShapeDtypeStruct((P * tile_b, 1), jnp.float32),
        grid_spec=pltpu.PrefetchScalarGridSpec(
            num_scalar_prefetch=0,
            grid=(P, T),
            in_specs=[
                pl.BlockSpec((tile_b, C), lambda p, i: (p * T + i, 0)),
                tgt_spec,
            ],
            # One VMEM-resident accumulator block per parallel slice; written
            # back to HBM once per slice (block index constant over the
            # "arbitrary" axis).
            out_specs=pl.BlockSpec((tile_b, 1), lambda p, i: (p, 0)),
        ),
        compiler_params=pltpu.CompilerParams(
            dimension_semantics=("parallel", "arbitrary"),
            vmem_limit_bytes=32 * 1024 * 1024,
        ),
    )(logits, tgt)

    return jnp.sum(partial_sums) / jnp.float32(B)


if __name__ == "__main__":
    key = jax.random.PRNGKey(0)
    k_logits, k_tgt, k_soft = jax.random.split(key, 3)

    # Non-multiple-of-tile batch exercises the padding + in-kernel row masking.
    B, C = 19, 32
    label_smoothing = 0.1

    logits = jax.random.normal(k_logits, (B, C), dtype=jnp.float32)
    targets_int = jax.random.randint(k_tgt, (B,), 0, C, dtype=jnp.int32)

    # Integer-target path (no one-hot materialized in HBM).
    loss = jax.block_until_ready(
        soft_cross_entropy_loss(logits, targets_int, label_smoothing))

    # Pure-JAX reference.
    t = jax.nn.one_hot(targets_int, C, dtype=jnp.float32)
    t = t * (1 - label_smoothing) + label_smoothing / C * (1 - t)
    logp = jax.nn.log_softmax(logits, axis=-1)
    ref = jnp.mean(-(t * logp).sum(axis=1))
    assert jnp.allclose(loss, ref, atol=1e-5, rtol=1e-5), (loss, ref)

    # Soft-target path with bf16 targets (kept bf16 on the wire, f32 math in-kernel).
    soft_t = jax.nn.softmax(
        jax.random.normal(k_soft, (B, C), dtype=jnp.float32), axis=-1)
    soft_t_bf16 = soft_t.astype(jnp.bfloat16)
    loss2 = jax.block_until_ready(
        soft_cross_entropy_loss(logits, soft_t_bf16, label_smoothing))
    t2 = soft_t_bf16.astype(jnp.float32)
    ref2 = jnp.mean(-((t2 * (1 - label_smoothing)
                       + label_smoothing / C * (1 - t2)) * logp).sum(axis=1))
    assert jnp.allclose(loss2, ref2, atol=1e-4, rtol=1e-4), (loss2, ref2)

    print("KERNEL_OK")
</pallas_src>

<mosaic_0001>
module attributes {stable_mosaic.version = 11 : i64} {
  func.func @_soft_ce_int_kernel(%arg0: i32, %arg1: i32, %arg2: memref<16x32xf32, #tpu.memory_space<vmem>>, %arg3: memref<16x1xi32, #tpu.memory_space<vmem>>, %arg4: memref<16x1xf32, #tpu.memory_space<vmem>>) attributes {dimension_semantics = [#tpu.dimension_semantics<parallel>, #tpu.dimension_semantics<arbitrary>], iteration_bounds = array<i64: 2, 1>, scalar_prefetch = 0 : i64, scratch_operands = 0 : i64, tpu.core_type = #tpu.core_type<tc>, window_params = [{transform_indices = @transform_0, window_bounds = array<i64: 16, 32>}, {transform_indices = @transform_1, window_bounds = array<i64: 16, 1>}, {transform_indices = @transform_2, window_bounds = array<i64: 16, 1>}]} {
    %c0_i32 = arith.constant 0 : i32
    %0 = arith.cmpi eq, %arg1, %c0_i32 : i32
    %1 = arith.extui %0 : i1 to i32
    %c0_i32_0 = arith.constant 0 : i32
    %2 = arith.cmpi ne, %1, %c0_i32_0 : i32
    scf.if %2 {
      %cst_18 = arith.constant 0.000000e+00 : f32
      %47 = vector.broadcast %cst_18 : f32 to vector<16x1xf32>
      %c0_19 = arith.constant 0 : index
      %c0_20 = arith.constant 0 : index
      %48 = vector.load %arg4[%c0_19, %c0_20] : memref<16x1xf32, #tpu.memory_space<vmem>>, vector<16x1xf32>
      tpu.vector_store %arg4[%c0_19, %c0_20], %47 {strides = array<i32>} : memref<16x1xf32, #tpu.memory_space<vmem>>, vector<16x1xf32>,
    } else {
    }
    %c0 = arith.constant 0 : index
    %c0_1 = arith.constant 0 : index
    %3 = vector.load %arg2[%c0, %c0_1] : memref<16x32xf32, #tpu.memory_space<vmem>>, vector<16x32xf32>
    %cst = arith.constant dense<0xFF800000> : vector<16xf32>
    %4 = vector.multi_reduction <maximumf>, %3, %cst [1] : vector<16x32xf32> to vector<16xf32>
    %5 = vector.shape_cast %4 : vector<16xf32> to vector<16x1xf32>
    %6 = vector.broadcast %5 : vector<16x1xf32> to vector<16x32xf32>
    %7 = arith.subf %3, %6 : vector<16x32xf32>
    %8 = math.exp %7 : vector<16x32xf32>
    %cst_2 = arith.constant dense<0.000000e+00> : vector<16xf32>
    %9 = vector.multi_reduction <add>, %8, %cst_2 [1] : vector<16x32xf32> to vector<16xf32>
    %10 = vector.shape_cast %9 : vector<16xf32> to vector<16x1xf32>
    %11 = math.log %10 : vector<16x1xf32>
    %12 = vector.broadcast %11 : vector<16x1xf32> to vector<16x32xf32>
    %13 = arith.subf %7, %12 : vector<16x32xf32>
    %cst_3 = arith.constant dense<0.000000e+00> : vector<16xf32>
    %14 = vector.multi_reduction <add>, %13, %cst_3 [1] : vector<16x32xf32> to vector<16xf32>
    %15 = vector.shape_cast %14 : vector<16xf32> to vector<16x1xf32>
    %c0_4 = arith.constant 0 : index
    %c0_5 = arith.constant 0 : index
    %16 = vector.load %arg3[%c0_4, %c0_5] : memref<16x1xi32, #tpu.memory_space<vmem>>, vector<16x1xi32>
    %17 = tpu.iota {dimensions = array<i32: 1>} : vector<16x32xi32>
    %18 = vector.broadcast %16 : vector<16x1xi32> to vector<16x32xi32>
    %19 = arith.cmpi eq, %17, %18 : vector<16x32xi32>
    %cst_6 = arith.constant 0.000000e+00 : f32
    %20 = vector.broadcast %cst_6 : f32 to vector<16x32xf32>
    %21 = arith.select %19, %13, %20 : vector<16x32xi1>, vector<16x32xf32>
    %cst_7 = arith.constant dense<0.000000e+00> : vector<16xf32>
    %22 = vector.multi_reduction <add>, %21, %cst_7 [1] : vector<16x32xf32> to vector<16xf32>
    %23 = vector.shape_cast %22 : vector<16xf32> to vector<16x1xf32>
    %cst_8 = arith.constant 1.000000e+00 : f32
    %cst_9 = arith.constant 1.000000e-01 : f32
    %24 = arith.subf %cst_8, %cst_9 : f32
    %25 = vector.broadcast %24 : f32 to vector<16x1xf32>
    %26 = arith.mulf %25, %23 : vector<16x1xf32>
    %cst_10 = arith.constant 1.000000e-01 : f32
    %cst_11 = arith.constant 3.125000e-02 : f32
    %27 = arith.mulf %cst_10, %cst_11 : f32
    %28 = arith.subf %15, %23 : vector<16x1xf32>
    %29 = vector.broadcast %27 : f32 to vector<16x1xf32>
    %30 = arith.mulf %29, %28 : vector<16x1xf32>
    %31 = arith.addf %26, %30 : vector<16x1xf32>
    %cst_12 = arith.constant 0.000000e+00 : f32
    %32 = vector.broadcast %cst_12 : f32 to vector<16x1xf32>
    %33 = arith.subf %32, %31 : vector<16x1xf32>
    %c1_i32 = arith.constant 1 : i32
    %34 = arith.muli %arg0, %c1_i32 : i32
    %35 = arith.addi %34, %arg1 : i32
    %c16_i32 = arith.constant 16 : i32
    %36 = arith.muli %35, %c16_i32 : i32
    %37 = tpu.iota {dimensions = array<i32: 0>} : vector<16x1xi32>
    %38 = vector.broadcast %36 : i32 to vector<16x1xi32>
    %39 = arith.addi %38, %37 : vector<16x1xi32>
    %c19_i32 = arith.constant 19 : i32
    %40 = vector.broadcast %c19_i32 : i32 to vector<16x1xi32>
    %41 = arith.cmpi slt, %39, %40 : vector<16x1xi32>
    %cst_13 = arith.constant 0.000000e+00 : f32
    %42 = vector.broadcast %cst_13 : f32 to vector<16x1xf32>
    %43 = arith.select %41, %33, %42 : vector<16x1xi1>, vector<16x1xf32>
    %c0_14 = arith.constant 0 : index
    %c0_15 = arith.constant 0 : index
    %44 = vector.load %arg4[%c0_14, %c0_15] : memref<16x1xf32, #tpu.memory_space<vmem>>, vector<16x1xf32>
    %45 = arith.addf %44, %43 : vector<16x1xf32>
    %c0_16 = arith.constant 0 : index
    %c0_17 = arith.constant 0 : index
    %46 = vector.load %arg4[%c0_16, %c0_17] : memref<16x1xf32, #tpu.memory_space<vmem>>, vector<16x1xf32>
    tpu.vector_store %arg4[%c0_16, %c0_17], %45 {strides = array<i32>} : memref<16x1xf32, #tpu.memory_space<vmem>>, vector<16x1xf32>,
    return
  }
  func.func @transform_0(%arg0: i32, %arg1: i32) -> (i32, i32) {
    %c1_i32 = arith.constant 1 : i32
    %0 = arith.muli %arg0, %c1_i32 : i32
    %1 = arith.addi %0, %arg1 : i32
    %c0_i32 = arith.constant 0 : i32
    %c0_i32_0 = arith.constant 0 : i32
    return %1, %c0_i32 : i32, i32
  }
  func.func @transform_1(%arg0: i32, %arg1: i32) -> (i32, i32) {
    %c1_i32 = arith.constant 1 : i32
    %0 = arith.muli %arg0, %c1_i32 : i32
    %1 = arith.addi %0, %arg1 : i32
    %c0_i32 = arith.constant 0 : i32
    %c0_i32_0 = arith.constant 0 : i32
    return %1, %c0_i32 : i32, i32
  }
  func.func @transform_2(%arg0: i32, %arg1: i32) -> (i32, i32) {
    %c0_i32 = arith.constant 0 : i32
    %c0_i32_0 = arith.constant 0 : i32
    return %arg0, %c0_i32 : i32, i32
  }
}

</mosaic_0001>

<bundles_post_ra>
// kernel: tpu_custom_call.1
= control target key start
LH: loop header
LB: loop body
LE: loop exit
PB: predicated region body
PF: predicated region fallthrough
CT: control target
= control target key end

     0   :  { %s452_s9 = smov 0   ;;  %s454_s10 = smov 0   ;;  %s512_s0 = inlined_call_operand.vmem [shape: f32[32,32], index: 0, kind: input, shape index: {}]   ;;  %s513_s1 = inlined_call_operand.vmem [shape: s32[32,1], index: 1, kind: input, shape index: {}]   ;;  %s514_s2 = inlined_call_operand.vmem [shape: f32[32,1], index: 2, kind: output, shape index: {}]  }
   0x1   :  { %s456_s11 = smov 0  }
   0x2 LB: > { %s24_s12 = sadd.s32 1, %s429_s10  ;;  %p365_p0 = scmp.ge.s32.totalorder %s433_s11, 1  ;;  %s433_s11 = sphi %s456_s11, %s12_s11   ;;  %s429_s10 = sphi %s454_s10, %s516_s10   ;;  %s425_s9 = sphi %s452_s9, %s515_s9  }
   0x3   : > { %p26_p1 = scmp.ge.s32.totalorder %s24_s12, 2  ;;  %p144_p2 = scmp.lt.s32.totalorder %s433_s11, 3 }
   0x5   : > { %s518_s12 = smov (%p26_p1, %s24_s12), 0  ;;  %p145_p3 = pnand %p365_p0, %p144_p2 }
   0x6   : > { %s366_s13 = sshll.u32 (!%p145_p3), %s425_s9, 1  ;;  %s372_s24 = sshll.u32 (!%p145_p3), %s425_s9, 4 }
   0x7   : > { %148 = sbr.rel (%p145_p3) target bundleno = 410 (0x19a), region = 28  ;;  %p175_p4 = scmp.lt.s32.totalorder (!%p145_p3), %s366_s13, 3 }
   0xc   : > { %s520_s13 = smov (!%p175_p4, %s366_s13), 3  ;;  %vm199_vm0 = vcmask 7168   ;;  %vm204_vm1 = vcmask 261120   ;;  %v435_v0 = vmov 0.0   ;;  %v436_v6 = vmov 0  }
   0xd   : > { %s367_s14 = sshll.u32 %s520_s13, 3  ;;  %401 = vset.pattern.permute.xlu2 %v436_v6  ;;  %402 = vset.pattern.permute.xlu0 %v436_v6  ;;  %v237_v19 = vlaneseq  ;;  %v270_v38 = vstv %s372_s24 }
   0xe   : > { %s178_s17 = scalar_lea.vmem %s512_s0, %s367_s14  ;;  %s479_s20 = scalar_lea.vmem %s514_s2, %s367_s14 }
   0xf   : > { %200 = vst.msk [vmem:[%s479_s20] sm:$0xff] %vm199_vm0, %v435_v0  ;;  %v202_v1 = vld [vmem:[%s178_s17] sm:$0xff]  ;;  %v203_v3 = vld [vmem:[%s178_s17 + $0x8] sm:$0xff]  ;;  %s186_s23 = scalar_lea.vmem %s513_s1, %s367_s14  ;;  %v238_v20 = vand.u32 127, %v237_v19  ;;  %v268_v36 = vshrl.u32 %v237_v19, 7 }
  0x10   : > { %201 = vst.msk [vmem:[%s479_s20 + $0x8] sm:$0xff] %vm199_vm0, %v435_v0  ;;  %v205_v2 = vsel %vm204_vm1, %v202_v1, -inf  ;;  %v208_v4 = vsel %vm204_vm1, %v203_v3, -inf  ;;  %v235_v5 = vld [vmem:[%s186_s23] sm:$0xff]  ;;  %v236_v7 = vld [vmem:[%s186_s23 + $0x8] sm:$0xff] }
  0x11   : > { %206 = vmax.xlane.f32.xlu0 %v205_v2  ;;  %240 = vperm.xlu2 %401, %v235_v5   ;;  %v271_v41 = vadd.s32 %v270_v38, %v268_v36  ;;  %v269_v45 = vadd.s32 8, %v268_v36 }
  0x13   : > { %vm273_vm4 = vcmp.lt.s32.totalorder %v271_v41, 19  ;;  %v272_v54 = vadd.s32 %v270_v38, %v269_v45 }
  0x15   : > { %vm274_vm5 = vcmp.lt.s32.totalorder %v272_v54, 19 }
  0x16   : > { %v277_v46 = vld [vmem:[%s479_s20] sm:$0xff] }
  0x17   : > { %v278_v51 = vld [vmem:[%s479_s20 + $0x8] sm:$0xff] }
  0x19   : > { %209 = vmax.xlane.f32.xlu0 %v208_v4  ;;  %243 = vperm.xlu2 %401, %v236_v7  }
  0x6b   : > { %v241_v21 = vpop.permute.xlu2 %240 }
  0x6c   : > { %vm245_vm2 = vcmp.eq.s32.totalorder %v238_v20, %v241_v21 }
  0x73   : > { %v244_v31 = vpop.permute.xlu2 %243 }
  0x74   : > { %vm246_vm3 = vcmp.eq.s32.totalorder %v238_v20, %v244_v31 }
  0x84   : > { %v207_v8 = vpop.xlane.xlu0 %206 }
  0x85   : > { %v211_v9 = vsub.f32 %v202_v1, %v207_v8 }
  0x87   : > { %v213_v10 = vmul.f32 1.442695, %v211_v9 }
  0x89   : > { %403 = vpow2.f32 %v213_v10 }
  0x8c   : > { %v210_v11 = vpop.xlane.xlu0 %209 }
  0x8d   : > { %v212_v12 = vsub.f32 %v203_v3, %v210_v11 }
  0x8f   : > { %v404_v13 = vpop.eup %403  ;;  %v215_v14 = vmul.f32 1.442695, %v212_v12 }
  0x90   : > { %v217_v15 = vsel %vm204_vm1, %v404_v13, 0.0 }
  0x91   : > { %405 = vpow2.f32 %v215_v14  ;;  %218 = vadd.xlane.f32.xlu1 %v217_v15 }
  0x97   : > { %v406_v16 = vpop.eup %405 }
  0x98   : > { %v220_v17 = vsel %vm204_vm1, %v406_v16, 0.0 }
  0x99   : > { %221 = vadd.xlane.f32.xlu1 %v220_v17 }
 0x104   : > { %v219_v18 = vpop.xlane.xlu1 %218 }
 0x105   : > { %407 = vlog2.f32 %v219_v18 }
 0x10b   : > { %v408_v22 = vpop.eup %407 }
 0x10c   : > { %v224_v23 = vmul.f32 0.6931472, %v408_v22  ;;  %v222_v24 = vpop.xlane.xlu1 %221 }
 0x10d   : > { %409 = vlog2.f32 %v222_v24 }
 0x10e   : > { %v227_v25 = vsub.f32 %v211_v9, %v224_v23 }
 0x110   : > { %v229_v26 = vsel %vm204_vm1, %v227_v25, 0.0  ;;  %v247_v27 = vsel %vm245_vm2, %v227_v25, 0.0 }
 0x111   : > { %230 = vadd.xlane.f32.xlu0 %v229_v26  ;;  %v249_v28 = vsel %vm204_vm1, %v247_v27, 0.0 }
 0x112   : > { %250 = vadd.xlane.f32.xlu1 %v249_v28 }
 0x113   : > { %v410_v29 = vpop.eup %409 }
 0x114   : > { %v226_v30 = vmul.f32 0.6931472, %v410_v29 }
 0x116   : > { %v228_v32 = vsub.f32 %v212_v12, %v226_v30 }
 0x118   : > { %v232_v33 = vsel %vm204_vm1, %v228_v32, 0.0  ;;  %v248_v34 = vsel %vm246_vm3, %v228_v32, 0.0 }
 0x119   : > { %233 = vadd.xlane.f32.xlu2 %v232_v33  ;;  %v252_v35 = vsel %vm204_vm1, %v248_v34, 0.0 }
 0x11a   : > { %253 = vadd.xlane.f32.xlu0 %v252_v35 }
 0x184   : > { %v231_v37 = vpop.xlane.xlu0 %230 }
 0x185   : > { %v251_v39 = vpop.xlane.xlu1 %250 }
 0x186   : > { %v257_v40 = vsub.f32 %v231_v37, %v251_v39  ;;  %v255_v42 = vmul.f32 0.9, %v251_v39 }
 0x188   : > { %v259_v43 = vmul.f32 0.003125, %v257_v40 }
 0x18a   : > { %v261_v44 = vadd.f32 %v259_v43, %v255_v42 }
 0x18c   : > { %v263_v47 = vsub.f32 0.0, %v261_v44  ;;  %v234_v48 = vpop.xlane.xlu2 %233 }
 0x18d   : > { %v254_v49 = vpop.xlane.xlu0 %253 }
 0x18e   : > { %v275_v50 = vsel %vm273_vm4, %v263_v47, 0.0  ;;  %v258_v52 = vsub.f32 %v234_v48, %v254_v49  ;;  %v256_v55 = vmul.f32 0.9, %v254_v49 }
 0x18f   : > { %v279_v53 = vadd.f32 %v277_v46, %v275_v50 }
 0x190   : > { %v260_v56 = vmul.f32 0.003125, %v258_v52 }
 0x191   : > { %282 = vst.msk [vmem:[%s479_s20] sm:$0xff] %vm199_vm0, %v279_v53 }
 0x192   : > { %v262_v57 = vadd.f32 %v260_v56, %v256_v55 }
 0x194   : > { %v264_v58 = vsub.f32 0.0, %v262_v57 }
 0x196   : > { %v276_v59 = vsel %vm274_vm5, %v264_v58, 0.0 }
 0x197   : > { %v280_v60 = vadd.f32 %v278_v51, %v276_v59 }
 0x199   : > { %283 = vst.msk [vmem:[%s479_s20 + $0x8] sm:$0xff] %vm199_vm0, %v280_v60 }
 0x19a PF: > { %s12_s11 = sadd.s32 1, %s433_s11   ;;  %s515_s9 = smov %s429_s10 }
 0x19b   : > { %p9_p5 = scmp.ge.s32.totalorder %s12_s11, 4   ;;  %s516_s10 = smov %s518_s12 }
 0x19d   :  { %11 = sbr.rel (!%p9_p5) target bundleno = 2 (0x2), region = 65 }

</bundles_post_ra>
